<compile_context>
chip_gen: v7x
topology: tpu7x:2x2x1
jax: 0.10.0
libtpu: 0.0.40
codegen_flags: <defaults>
</compile_context>

<pallas_src>
import jax
import jax.numpy as jnp
from jax.experimental import pallas as pl
from jax.experimental.pallas import tpu as pltpu

_LANE = 128


def _round_up(x, m):
    return ((x + m - 1) // m) * m


def _choose_tile_n(n, max_tile):
    """Row-tile size.

    Small graphs: a single sublane-aligned (8) tile -- no redundant rows.
    Large graphs: 256-aligned tiles (MXU-row aligned on every generation),
    sized so the grid has >= 4 steps (feeds both v7x TensorCores with >= 2
    pipelined steps each), capped at max_tile.
    """
    n8 = _round_up(max(n, 1), 8)
    if n8 <= 512:
        return n8
    tile = _round_up(pl.cdiv(n8, 4), 256)
    return min(max_tile, tile)


def _mish(x):
    # mish(x) = x * tanh(softplus(x)).
    # tanh(softplus(x)) = t / (t + 2) with t = e^x * (e^x + 2).
    # One EUP exp + one EUP approx reciprocal; the clamp keeps exp finite and
    # is exact for x >= 20 (factor == 1.0 to f32 precision there).
    ex = jnp.exp(jnp.minimum(x, 20.0))
    t = ex * (ex + 2.0)
    return x * (t * pl.reciprocal(t + 2.0, approx=True))


def _move_mlp_kernel(x_ref, w1_ref, b1_ref, w2_ref, b2_ref, o_ref):
    x = x_ref[...]
    # Hidden layer: Linear(node_dim -> hidden) + mish  (MXU + VPU/EUP).
    h = jnp.dot(x, w1_ref[...], preferred_element_type=jnp.float32) + b1_ref[...]
    h = _mish(h)
    # Output layer: Linear(hidden -> move_dim_padded), no output activation.
    o = jnp.dot(h, w2_ref[...], preferred_element_type=jnp.float32) + b2_ref[...]
    o_ref[...] = o.astype(o_ref.dtype)


def move_module_forward(node_feature, params, *, max_tile_n=1024):
    """Applies the MoveModule MLP to every node (row) of node_feature.

    node_feature: [N, node_dim] float32
    params: dict with w1 [node_dim, H], b1 [1, H], w2 [H, move_dim], b2 [1, move_dim]
    returns: [N, move_dim] float32
    """
    w1, b1, w2, b2 = params["w1"], params["b1"], params["w2"], params["b2"]
    n, node_dim = node_feature.shape
    hidden = w1.shape[1]
    move_dim = w2.shape[1]

    # Lane padding on the tiny weight matrices only (one-time, KiB-scale).
    # node_feature itself is consumed as-is: its block's last dim equals the
    # full node_dim, and K=node_dim feeds the MXU directly.
    hid_pad = _round_up(hidden, _LANE)
    out_pad = _round_up(move_dim, _LANE)

    if hid_pad == hidden:
        w1_p, b1_p = w1, b1
    else:
        w1_p = jnp.zeros((node_dim, hid_pad), jnp.float32).at[:, :hidden].set(w1)
        b1_p = jnp.zeros((1, hid_pad), jnp.float32).at[:, :hidden].set(b1)
    w2_p = jnp.zeros((hid_pad, out_pad), jnp.float32).at[:hidden, :move_dim].set(w2)
    b2_p = jnp.zeros((1, out_pad), jnp.float32).at[:, :move_dim].set(b2)

    tile_n = _choose_tile_n(n, max_tile_n)
    grid = (pl.cdiv(n, tile_n),)
    n_rows = grid[0] * tile_n  # rows actually processed (last block partial)

    # VMEM budget: double-buffered x / out tiles + double-buffered (constant
    # index) weights, with 2x headroom, clamped to [8 MiB, 32 MiB] so it is
    # always safe on v7x's 64 MiB physical VMEM.
    vmem_need = 4 * (2 * tile_n * node_dim
                     + 2 * tile_n * out_pad
                     + 2 * (node_dim * hid_pad + hid_pad
                            + hid_pad * out_pad + out_pad))
    vmem_limit = min(32 << 20, max(8 << 20, 2 * vmem_need))

    cost = pl.CostEstimate(
        flops=2 * n_rows * (node_dim * hid_pad + hid_pad * out_pad),
        transcendentals=2 * n_rows * hid_pad,  # exp + approx recip per hidden elem
        bytes_accessed=4 * (n_rows * node_dim + n_rows * out_pad
                            + node_dim * hid_pad + hid_pad
                            + hid_pad * out_pad + out_pad),
    )

    out_p = pl.pallas_call(
        _move_mlp_kernel,
        out_shape=jax.ShapeDtypeStruct((n, out_pad), jnp.float32),
        grid_spec=pltpu.PrefetchScalarGridSpec(
            num_scalar_prefetch=0,
            grid=grid,
            in_specs=[
                # node tile: iterate over node-row tiles; last dim == node_dim
                # (full-dim exemption from the 128 rule), no padded copy.
                pl.BlockSpec((tile_n, node_dim), lambda i: (i, 0)),
                # weights / biases: full, VMEM-resident across all grid steps
                pl.BlockSpec((node_dim, hid_pad), lambda i: (0, 0)),
                pl.BlockSpec((1, hid_pad), lambda i: (0, 0)),
                pl.BlockSpec((hid_pad, out_pad), lambda i: (0, 0)),
                pl.BlockSpec((1, out_pad), lambda i: (0, 0)),
            ],
            out_specs=pl.BlockSpec((tile_n, out_pad), lambda i: (i, 0)),
        ),
        compiler_params=pltpu.CompilerParams(
            dimension_semantics=("parallel",),  # row tiles shard across TCs (v7x)
            vmem_limit_bytes=vmem_limit,
        ),
        cost_estimate=cost,
    )(node_feature, w1_p, b1_p, w2_p, b2_p)

    # Strip the lane padding of the output dim (rows already exactly N).
    return out_p[:, :move_dim]


def init_params(key, node_dim, hidden=128, move_dim=4):
    """Deterministic synthetic init matching MLP(node_dim, move_dim, [128])."""
    k1, k2, k3, k4 = jax.random.split(key, 4)
    # Uniform(-1/sqrt(fan_in), 1/sqrt(fan_in)) like torch.nn.Linear default.
    lim1 = 1.0 / jnp.sqrt(node_dim)
    lim2 = 1.0 / jnp.sqrt(hidden)
    return {
        "w1": jax.random.uniform(k1, (node_dim, hidden), jnp.float32, -lim1, lim1),
        "b1": jax.random.uniform(k2, (1, hidden), jnp.float32, -lim1, lim1),
        "w2": jax.random.uniform(k3, (hidden, move_dim), jnp.float32, -lim2, lim2),
        "b2": jax.random.uniform(k4, (1, move_dim), jnp.float32, -lim2, lim2),
    }


def _reference(node_feature, params):
    h = node_feature @ params["w1"] + params["b1"]
    h = h * jnp.tanh(jnp.logaddexp(0.0, h))   # canonical mish
    return h @ params["w2"] + params["b2"]


if __name__ == "__main__":
    key = jax.random.PRNGKey(0)
    kx, kp = jax.random.split(key)

    num_nodes = 16   # number of graph nodes (batched over all graphs)
    node_dim = 32
    hidden = 128
    move_dim = 4

    node_feature = jax.random.normal(kx, (num_nodes, node_dim), jnp.float32)
    params = init_params(kp, node_dim, hidden, move_dim)

    # TODO(synk): DGL graph object (apply_nodes/ndata) carries no compute; only
    # the per-node MLP is implemented as a kernel.
    move_argument = move_module_forward(node_feature, params)
    move_argument = jax.block_until_ready(move_argument)

    ref = _reference(node_feature, params)
    assert move_argument.shape == (num_nodes, move_dim)
    # approx-reciprocal mish (EUP) -> slightly looser tolerance than exact divide
    err = float(jnp.max(jnp.abs(move_argument - ref)))
    assert jnp.allclose(move_argument, ref, atol=1e-2, rtol=1e-2), err

    print("KERNEL_OK")
</pallas_src>

<mosaic_0001>
module attributes {stable_mosaic.version = 11 : i64} {
  func.func @_move_mlp_kernel(%arg0: i32, %arg1: memref<16x32xf32, #tpu.memory_space<vmem>>, %arg2: memref<32x128xf32, #tpu.memory_space<vmem>>, %arg3: memref<1x128xf32, #tpu.memory_space<vmem>>, %arg4: memref<128x128xf32, #tpu.memory_space<vmem>>, %arg5: memref<1x128xf32, #tpu.memory_space<vmem>>, %arg6: memref<16x128xf32, #tpu.memory_space<vmem>>) attributes {dimension_semantics = [#tpu.dimension_semantics<parallel>], iteration_bounds = array<i64: 1>, scalar_prefetch = 0 : i64, scratch_operands = 0 : i64, tpu.core_type = #tpu.core_type<tc>, window_params = [{transform_indices = @transform_0, window_bounds = array<i64: 16, 32>}, {pipeline_mode = #tpu.pipeline_mode<synchronous>, transform_indices = @transform_1, window_bounds = array<i64: 32, 128>}, {pipeline_mode = #tpu.pipeline_mode<synchronous>, transform_indices = @transform_2, window_bounds = array<i64: 1, 128>}, {pipeline_mode = #tpu.pipeline_mode<synchronous>, transform_indices = @transform_3, window_bounds = array<i64: 128, 128>}, {pipeline_mode = #tpu.pipeline_mode<synchronous>, transform_indices = @transform_4, window_bounds = array<i64: 1, 128>}, {transform_indices = @transform_5, window_bounds = array<i64: 16, 128>}]} {
    %c0 = arith.constant 0 : index
    %c0_0 = arith.constant 0 : index
    %0 = vector.load %arg1[%c0, %c0_0] : memref<16x32xf32, #tpu.memory_space<vmem>>, vector<16x32xf32>
    %c0_1 = arith.constant 0 : index
    %c0_2 = arith.constant 0 : index
    %1 = vector.load %arg2[%c0_1, %c0_2] : memref<32x128xf32, #tpu.memory_space<vmem>>, vector<32x128xf32>
    %cst = arith.constant dense<0.000000e+00> : vector<16x128xf32>
    %2 = tpu.matmul %0, %1, %cst {dimension_numbers = #tpu.dot_dimension_numbers<[1], [0], [0], [1], [0, 0, 1, 1], [], []>} : vector<16x32xf32>, vector<32x128xf32>, vector<16x128xf32> -> vector<16x128xf32>
    %c0_3 = arith.constant 0 : index
    %c0_4 = arith.constant 0 : index
    %3 = vector.load %arg3[%c0_3, %c0_4] : memref<1x128xf32, #tpu.memory_space<vmem>>, vector<1x128xf32>
    %4 = vector.broadcast %3 : vector<1x128xf32> to vector<16x128xf32>
    %5 = arith.addf %2, %4 : vector<16x128xf32>
    %cst_5 = arith.constant 2.000000e+01 : f32
    %6 = vector.broadcast %cst_5 : f32 to vector<16x128xf32>
    %7 = arith.minimumf %5, %6 : vector<16x128xf32>
    %8 = math.exp %7 : vector<16x128xf32>
    %cst_6 = arith.constant 2.000000e+00 : f32
    %9 = vector.broadcast %cst_6 : f32 to vector<16x128xf32>
    %10 = arith.addf %8, %9 : vector<16x128xf32>
    %11 = arith.mulf %8, %10 : vector<16x128xf32>
    %cst_7 = arith.constant 2.000000e+00 : f32
    %12 = vector.broadcast %cst_7 : f32 to vector<16x128xf32>
    %13 = arith.addf %11, %12 : vector<16x128xf32>
    %14 = tpu.reciprocal %13 {approx = true} : vector<16x128xf32> -> vector<16x128xf32>
    %15 = arith.mulf %11, %14 : vector<16x128xf32>
    %16 = arith.mulf %5, %15 : vector<16x128xf32>
    %c0_8 = arith.constant 0 : index
    %c0_9 = arith.constant 0 : index
    %17 = vector.load %arg4[%c0_8, %c0_9] : memref<128x128xf32, #tpu.memory_space<vmem>>, vector<128x128xf32>
    %cst_10 = arith.constant dense<0.000000e+00> : vector<16x128xf32>
    %18 = tpu.matmul %16, %17, %cst_10 {dimension_numbers = #tpu.dot_dimension_numbers<[1], [0], [0], [1], [0, 0, 1, 1], [], []>} : vector<16x128xf32>, vector<128x128xf32>, vector<16x128xf32> -> vector<16x128xf32>
    %c0_11 = arith.constant 0 : index
    %c0_12 = arith.constant 0 : index
    %19 = vector.load %arg5[%c0_11, %c0_12] : memref<1x128xf32, #tpu.memory_space<vmem>>, vector<1x128xf32>
    %20 = vector.broadcast %19 : vector<1x128xf32> to vector<16x128xf32>
    %21 = arith.addf %18, %20 : vector<16x128xf32>
    %c0_13 = arith.constant 0 : index
    %c0_14 = arith.constant 0 : index
    %22 = vector.load %arg6[%c0_13, %c0_14] : memref<16x128xf32, #tpu.memory_space<vmem>>, vector<16x128xf32>
    tpu.vector_store %arg6[%c0_13, %c0_14], %21 {strides = array<i32>} : memref<16x128xf32, #tpu.memory_space<vmem>>, vector<16x128xf32>,
    return
  }
  func.func @transform_0(%arg0: i32) -> (i32, i32) {
    %c0_i32 = arith.constant 0 : i32
    %c0_i32_0 = arith.constant 0 : i32
    return %arg0, %c0_i32 : i32, i32
  }
  func.func @transform_1(%arg0: i32) -> (i32, i32) {
    %c0_i32 = arith.constant 0 : i32
    %c0_i32_0 = arith.constant 0 : i32
    %c0_i32_1 = arith.constant 0 : i32
    return %c0_i32, %c0_i32_0 : i32, i32
  }
  func.func @transform_2(%arg0: i32) -> (i32, i32) {
    %c0_i32 = arith.constant 0 : i32
    %c0_i32_0 = arith.constant 0 : i32
    %c0_i32_1 = arith.constant 0 : i32
    return %c0_i32, %c0_i32_0 : i32, i32
  }
  func.func @transform_3(%arg0: i32) -> (i32, i32) {
    %c0_i32 = arith.constant 0 : i32
    %c0_i32_0 = arith.constant 0 : i32
    %c0_i32_1 = arith.constant 0 : i32
    return %c0_i32, %c0_i32_0 : i32, i32
  }
  func.func @transform_4(%arg0: i32) -> (i32, i32) {
    %c0_i32 = arith.constant 0 : i32
    %c0_i32_0 = arith.constant 0 : i32
    %c0_i32_1 = arith.constant 0 : i32
    return %c0_i32, %c0_i32_0 : i32, i32
  }
  func.func @transform_5(%arg0: i32) -> (i32, i32) {
    %c0_i32 = arith.constant 0 : i32
    %c0_i32_0 = arith.constant 0 : i32
    return %arg0, %c0_i32 : i32, i32
  }
}

</mosaic_0001>

<bundles_post_ra>
// kernel: tpu_custom_call.1
= control target key start
LH: loop header
LB: loop body
LE: loop exit
PB: predicated region body
PF: predicated region fallthrough
CT: control target
= control target key end

     0   :  { %10 = vsyncpa [#allocation3], 0  ;;  %s624_s0 = inlined_call_operand.hbm [shape: f32[16,32], index: 0, kind: input, shape index: {}]   ;;  %s625_s1 = inlined_call_operand.hbm [shape: f32[32,128], index: 1, kind: input, shape index: {}]   ;;  %s626_s2 = inlined_call_operand.vmem [shape: f32[1,128], index: 2, kind: input, shape index: {}]   ;;  %s627_s3 = inlined_call_operand.hbm [shape: f32[128,128], index: 3, kind: input, shape index: {}]   ;;  %s628_s4 = inlined_call_operand.vmem [shape: f32[1,128], index: 4, kind: input, shape index: {}]   ;;  %s629_s5 = inlined_call_operand.hbm [shape: f32[16,128], index: 5, kind: output, shape index: {}]  }
   0x1   :  { %11 = vsyncpa [#allocation6], 0 }
   0x2   :  { %12 = vsyncpa [#allocation4], 0  ;;  %s515_s18 = smov [#allocation5]   ;;  %s516_s20 = smov [#allocation2]  }
   0x3   :  { %s30_s19 = sshll.u32 %s515_s18, 4  ;;  %s18_s21 = sshll.u32 %s516_s20, 4  ;;  %s31_s19 = int_to_ptr.vmem [resolvable:$true] %s30_s19  ;;  %s551_s21 = int_to_ptr.vmem [resolvable:$true] %s18_s21 }
   0x4   :  { %s421_s24 = scalar_lea.hbm %s625_s1, 512 }
   0x5   :  { %p422_p0 = scmp.ne.s32.totalorder %s625_s1, %s421_s24  ;;  %p425_p1 = scmp.lt.u32.totalorder %s421_s24, %s625_s1 }
   0x7   :  { %p427_p2 = pnand %p425_p1, %p422_p0 }
   0x9   :  { %430 = shalt.err (!%p427_p2)
}
   0xa   :  { %s431_s29 = scalar_lea.vmem %s31_s19, 512  ;;  %p436_p4 = scmp.lt.s32.totalorder %s31_s19, %s31_s19 }
   0xb   :  { %p432_p3 = scmp.ne.s32.totalorder %s31_s19, %s431_s29  ;;  %p437_p5 = scmp.lt.s32.totalorder %s431_s29, %s431_s29 }
   0xd   :  { %p438_p6 = por %p437_p5, %p436_p4 }
   0xf   :  { %p439_p7 = pnand %p438_p6, %p432_p3 }
  0x11   :  { %442 = shalt.err (!%p439_p7)
}
  0x12   :  { %s517_s30 = smov 128   ;;  %s518_s6 = smov 8  }
  0x13   :  { %36 = dma.hbm_to_vmem [thread:$0]  %s625_s1, 512, %s31_s19, [#allocation6], %s517_s30, %s517_s30, %s518_s6  }
  0x14   :  { %s443_s11 = scalar_lea.hbm %s624_s0, 256 }
  0x15   :  { %p444_p8 = scmp.ne.s32.totalorder %s624_s0, %s443_s11  ;;  %p447_p9 = scmp.lt.u32.totalorder %s443_s11, %s624_s0 }
  0x17   :  { %p449_p10 = pnand %p447_p9, %p444_p8 }
  0x19   :  { %452 = shalt.err (!%p449_p10)
}
  0x1a   :  { %s453_s16 = scalar_lea.vmem %s551_s21, 256  ;;  %p458_p12 = scmp.lt.s32.totalorder %s551_s21, %s551_s21 }
  0x1b   :  { %p454_p11 = scmp.ne.s32.totalorder %s551_s21, %s453_s16  ;;  %p459_p13 = scmp.lt.s32.totalorder %s453_s16, %s453_s16 }
  0x1d   :  { %p460_p0 = por %p459_p13, %p458_p12 }
  0x1f   :  { %p461_p1 = pnand %p460_p0, %p454_p11 }
  0x21   :  { %464 = shalt.err (!%p461_p1)
}
  0x22   :  { %24 = dma.hbm_to_vmem [thread:$0]  %s624_s0, 256, %s551_s21, [#allocation3], %s517_s30, %s517_s30, %s518_s6  }
  0x23   :  { %s519_s18 = smov [#allocation7]   ;;  %s465_s23 = scalar_lea.hbm %s627_s3, 2048 }
  0x24   :  { %s44_s19 = sshll.u32 %s519_s18, 4  ;;  %p466_p2 = scmp.ne.s32.totalorder %s627_s3, %s465_s23  ;;  %s45_s19 = int_to_ptr.vmem [resolvable:$true] %s44_s19 }
  0x25   :  { %p469_p3 = scmp.lt.u32.totalorder %s465_s23, %s627_s3 }
  0x27   :  { %p471_p4 = pnand %p469_p3, %p466_p2 }
  0x29   :  { %474 = shalt.err (!%p471_p4)
}
  0x2a   :  { %s475_s28 = scalar_lea.vmem %s45_s19, 2048  ;;  %p480_p6 = scmp.lt.s32.totalorder %s45_s19, %s45_s19 }
  0x2b   :  { %p476_p5 = scmp.ne.s32.totalorder %s45_s19, %s475_s28  ;;  %p481_p7 = scmp.lt.s32.totalorder %s475_s28, %s475_s28 }
  0x2d   :  { %p482_p8 = por %p481_p7, %p480_p6 }
  0x2f   :  { %p483_p9 = pnand %p482_p8, %p476_p5 }
  0x31   :  { %486 = shalt.err (!%p483_p9)
}
  0x32   :  { %50 = dma.hbm_to_vmem [thread:$0]  %s627_s3, 2048, %s45_s19, [#allocation6], %s517_s30, %s517_s30, %s518_s6  }
  0x33   :  { %509 = dma.done.wait [#allocation3], 256  }
  0x34   :  { %510 = vsyncadd [#allocation3], 4294967040 }
  0x35   :  { %511 = dma.done.wait [#allocation6], 2560  }
  0x36   :  { %512 = vsyncadd [#allocation6], 4294964736  ;;  %vm75_vm0 = vcmask 261120   ;;  %v64_v0 = vld [vmem:[#allocation5] sm:$0xff]  ;;  %v65_v1 = vld [vmem:[#allocation5 + $0x8] sm:$0xff]  ;;  %s520_s8 = smov [#allocation8]  }
  0x37   :  { %v66_v2 = vld [vmem:[#allocation5 + $0x10] sm:$0xff]  ;;  %v367_v3 = vpack.c.bf16 %v65_v1, %v64_v0  ;;  %v67_v4 = vld [vmem:[#allocation5 + $0x18] sm:$0xff]  ;;  %v175_v8 = vld [vmem:[#allocation7] sm:$0xff]  ;;  %s280_s9 = sshll.u32 %s520_s8, 4  ;;  %s281_s9 = int_to_ptr.vmem [resolvable:$true] %s280_s9 }
  0x38   :  { %v62_v5 = vld [vmem:[#allocation2] sm:$0xff]  ;;  %v371_v6 = vpack.c.bf16 %v67_v4, %v66_v2  ;;  %v63_v7 = vld [vmem:[#allocation2 + $0x8] sm:$0xff]  ;;  %v176_v9 = vld [vmem:[#allocation7 + $0x8] sm:$0xff]  ;;  %s487_s10 = scalar_lea.vmem %s281_s9, 256  ;;  %p492_p11 = scmp.lt.s32.totalorder %s281_s9, %s281_s9 }
  0x39   :  { %329 = vmatprep.mubr.msk.f32.mxu0 %vm75_vm0, %v62_v5  ;;  %368 = vmatprep.subr.bf16.mxu0 %v367_v3  ;;  %v375_v10 = vpack.c.bf16 %v176_v9, %v175_v8  ;;  %v177_v11 = vld [vmem:[#allocation7 + $0x10] sm:$0xff]  ;;  %v178_v12 = vld [vmem:[#allocation7 + $0x18] sm:$0xff]  ;;  %v179_v14 = vld [vmem:[#allocation7 + $0x20] sm:$0xff]  ;;  %p488_p10 = scmp.ne.s32.totalorder %s281_s9, %s487_s10  ;;  %p493_p12 = scmp.lt.s32.totalorder %s487_s10, %s487_s10 }
  0x3a   :  { %370 = vmatpush3.bf16.msra.mxu0 %v367_v3  ;;  %v379_v13 = vpack.c.bf16 %v178_v12, %v177_v11  ;;  %v180_v15 = vld [vmem:[#allocation7 + $0x28] sm:$0xff]  ;;  %v181_v17 = vld [vmem:[#allocation7 + $0x30] sm:$0xff]  ;;  %v182_v18 = vld [vmem:[#allocation7 + $0x38] sm:$0xff] }
  0x3b   :  { %372 = vmatprep.subr.bf16.mxu0 %v371_v6  ;;  %376 = vmatprep.subr.bf16.mxu1 %v375_v10  ;;  %v383_v16 = vpack.c.bf16 %v180_v15, %v179_v14  ;;  %v387_v19 = vpack.c.bf16 %v182_v18, %v181_v17  ;;  %v183_v20 = vld [vmem:[#allocation7 + $0x40] sm:$0xff]  ;;  %v184_v21 = vld [vmem:[#allocation7 + $0x48] sm:$0xff]  ;;  %v185_v23 = vld [vmem:[#allocation7 + $0x50] sm:$0xff]  ;;  %p494_p13 = por %p493_p12, %p492_p11 }
  0x3c   :  { %378 = vmatpush3.bf16.msra.mxu1 %v375_v10  ;;  %v391_v22 = vpack.c.bf16 %v184_v21, %v183_v20  ;;  %v186_v24 = vld [vmem:[#allocation7 + $0x58] sm:$0xff]  ;;  %v187_v26 = vld [vmem:[#allocation7 + $0x60] sm:$0xff]  ;;  %v188_v27 = vld [vmem:[#allocation7 + $0x68] sm:$0xff] }
  0x3d   :  { %380 = vmatprep.subr.bf16.mxu1 %v379_v13  ;;  %v395_v25 = vpack.c.bf16 %v186_v24, %v185_v23  ;;  %v399_v28 = vpack.c.bf16 %v188_v27, %v187_v26  ;;  %v189_v29 = vld [vmem:[#allocation7 + $0x70] sm:$0xff]  ;;  %v190_v30 = vld [vmem:[#allocation7 + $0x78] sm:$0xff]  ;;  %p495_p0 = pnand %p494_p13, %p488_p10 }
  0x3e   :  { %374 = vmatpush3.bf16.msra.mxu0 %v371_v6  ;;  %v403_v31 = vpack.c.bf16 %v190_v30, %v189_v29  ;;  %v293_v32 = vld [vmem:[%s626_s2] ss:$0 sm:$0xff] }
  0x3f   :  { %v296_v55 = vld [vmem:[%s628_s4] ss:$0 sm:$0xff] }
  0x40   :  { %382 = vmatpush3.bf16.msra.mxu1 %v379_v13 }
  0x41   :  { %330 = vmatmul.mubr.msk.f32.vlgmr.msra.gmra.mrb[0].mxu0 %vm75_vm0, %v63_v7  ;;  %384 = vmatprep.subr.bf16.mxu1 %v383_v16 }
  0x44   :  { %386 = vmatpush3.bf16.msra.mxu1 %v383_v16 }
  0x45   :  { %388 = vmatprep.subr.bf16.mxu1 %v387_v19 }
  0x48   :  { %390 = vmatpush3.bf16.msra.mxu1 %v387_v19 }
  0x49   :  { %392 = vmatprep.subr.bf16.mxu1 %v391_v22 }
  0x4c   :  { %394 = vmatpush3.bf16.msra.mxu1 %v391_v22 }
  0x4d   :  { %396 = vmatprep.subr.bf16.mxu1 %v395_v25 }
  0x50   :  { %398 = vmatpush3.bf16.msra.mxu1 %v395_v25 }
  0x51   :  { %400 = vmatprep.subr.bf16.mxu1 %v399_v28 }
  0x54   :  { %402 = vmatpush3.bf16.msra.mxu1 %v399_v28 }
  0x55   :  { %404 = vmatprep.subr.bf16.mxu1 %v403_v31 }
  0x58   :  { %406 = vmatpush3.bf16.msra.mxu1 %v403_v31 }
 0x114   :  { %v331_v33 = vpop.f32.mrb[0].mxu0 }
 0x115   :  { %v154_v34 = vadd.f32 %v331_v33, %v293_v32  ;;  %v148_v35 = vpop.f32.mrb[1].mxu0 }
 0x116   :  { %v149_v36 = vadd.f32 %v293_v32, %v148_v35 }
 0x117   :  { %v158_v37 = vmin.f32 %v154_v34, 20.0 }
 0x118   :  { %v157_v38 = vmin.f32 %v149_v36, 20.0 }
 0x119   :  { %v161_v39 = vmul.f32 1.442695, %v158_v37 }
 0x11a   :  { %v159_v40 = vmul.f32 1.442695, %v157_v38 }
 0x11b   :  { %413 = vpow2.f32 %v161_v39 }
 0x11c   :  { %415 = vpow2.f32 %v159_v40 }
 0x125   :  { %v414_v41 = vpop.eup %413 }
 0x126   :  { %v416_v42 = vpop.eup %415  ;;  %v164_v43 = vadd.f32 2.0, %v414_v41 }
 0x127   :  { %v163_v44 = vadd.f32 2.0, %v416_v42 }
 0x128   :  { %v166_v45 = vmul.f32 %v414_v41, %v164_v43 }
 0x129   :  { %v165_v46 = vmul.f32 %v416_v42, %v163_v44 }
 0x12a   :  { %v168_v47 = vadd.f32 2.0, %v166_v45 }
 0x12b   :  { %v167_v48 = vadd.f32 2.0, %v165_v46 }
 0x12c   :  { %417 = vrcp.f32 %v168_v47 }
 0x12d   :  { %419 = vrcp.f32 %v167_v48 }
 0x136   :  { %v418_v49 = vpop.eup %417 }
 0x137   :  { %v420_v50 = vpop.eup %419  ;;  %v172_v51 = vmul.f32 %v418_v49, %v166_v45 }
 0x138   :  { %v171_v52 = vmul.f32 %v420_v50, %v165_v46 }
 0x139   :  { %v174_v54 = vmul.f32 %v172_v51, %v154_v34 }
 0x13a   :  { %v173_v53 = vmul.f32 %v171_v52, %v149_v36 }
 0x13c   :  { %364 = vmatprep.mubr.f32.mxu1 %v173_v53 }
 0x13d   :  { %365 = vmatmul.mubr.f32.vlgmr.msra.gmra.mrb[0].mxu1 %v174_v54 }
 0x210   :  { %v366_v56 = vpop.f32.mrb[0].mxu1 }
 0x211   :  { %v270_v57 = vadd.f32 %v366_v56, %v296_v55  ;;  %v264_v58 = vpop.f32.mrb[1].mxu1 }
 0x212   :  { %v265_v59 = vadd.f32 %v296_v55, %v264_v58 }
 0x213   :  { %274 = vst [vmem:[#allocation8 + $0x8] sm:$0xff] %v270_v57 }
 0x214   :  { %273 = vst [vmem:[#allocation8] sm:$0xff] %v265_v59 }
 0x215   :  { %498 = shalt.err (!%p495_p0)
}
 0x216   :  { %s499_s4 = scalar_lea.hbm %s629_s5, 256 }
 0x217   :  { %p500_p1 = scmp.ne.s32.totalorder %s629_s5, %s499_s4  ;;  %p503_p2 = scmp.lt.u32.totalorder %s499_s4, %s629_s5 }
 0x219   :  { %p505_p3 = pnand %p503_p2, %p500_p1 }
 0x21b   :  { %508 = shalt.err (!%p505_p3)
}
 0x21c   :  { %286 = dma.vmem_to_hbm [thread:$0]  %s281_s9, 256, %s629_s5, [#allocation4], %s517_s30, %s517_s30, %s518_s6  }
 0x21d   :  { %513 = dma.done.wait [#allocation4], 256  }
 0x21e   :  { %514 = vsyncadd [#allocation4], 4294967040 }
 0x21f   :  { %290 = vsyncpa [#allocation3], 1 }
 0x220   :  { %291 = vsyncpa [#allocation6], 1 }
 0x221   :  { %292 = vsyncpa [#allocation4], 1 }

</bundles_post_ra>
